<compile_context>
chip_gen: v7x
topology: tpu7x:2x2x1
jax: 0.10.0
libtpu: 0.0.40
codegen_flags: <defaults>
</compile_context>

<pallas_src>
import functools

import jax
import jax.numpy as jnp
from jax.experimental import pallas as pl
from jax.experimental.pallas import tpu as pltpu

EPS = 1e-5                      # nn.BatchNorm2d default eps
VMEM_LIMIT_BYTES = 48 * 1024 * 1024


def _conv_stats_kernel(xk_ref, w_ref, b_ref, y_ref, psum_ref, psq_ref, *,
                       t_rows, w_cols, kh_taps):
    """One (batch, HW-tile) grid step: KH shifted matmuls + bias + per-tile batch stats.

    xk_ref : (1, (H+2p)*W, KW*Cin) bf16  -- KW-expanded, H-padded, spatially flat input
    w_ref  : (KH, KW*Cin, Cout)    bf16
    b_ref  : (1, Cout)             f32
    y_ref  : (1, t_rows, Cout)     bf16  -- conv + bias output tile
    psum_ref/psq_ref : (1, 1, 1, Cout) f32 -- per-tile partial sum / sum-of-squares
    """
    t = pl.program_id(1)
    m0 = t * t_rows
    cout = w_ref.shape[-1]

    acc = jnp.zeros((t_rows, cout), dtype=jnp.float32)
    for kh in range(kh_taps):                      # static loop: KH shifted 2-D matmuls
        start = m0 + kh * w_cols
        if (w_cols % 8 == 0) and (t_rows % 8 == 0):
            start = pl.multiple_of(start, 8)       # sublane-aligned dynamic slice
        patch = xk_ref[0, pl.ds(start, t_rows), :]               # (t_rows, KW*Cin) bf16
        acc = acc + jnp.dot(patch, w_ref[kh],
                            preferred_element_type=jnp.float32)  # MXU, f32 accumulate

    # Per-tile partial stats of the PRE-bias conv output (all f32, before bf16 cast).
    # Cross-sublane sums go to the XLU slot (overlaps with VPU/MXU work).
    s = jnp.sum(acc, axis=0, keepdims=True)        # (1, Cout)
    sq = jnp.sum(acc * acc, axis=0, keepdims=True)
    psum_ref[...] = s[None, None]
    psq_ref[...] = sq[None, None]

    y_ref[...] = (acc + b_ref[...])[None].astype(y_ref.dtype)


def _bn_relu_kernel(y_ref, scale_ref, shift_ref, o_ref):
    """Streaming BN-affine + ReLU: o = max(y * scale + shift, 0). bf16 in/out, f32 math."""
    y = y_ref[...].astype(jnp.float32)                       # (1, t_rows, Cout)
    o = jnp.maximum(y * scale_ref[...] + shift_ref[...], 0.0)
    o_ref[...] = o.astype(o_ref.dtype)


@functools.partial(jax.jit, static_argnames=("kernel_size", "t_h"))
def conv_bn_relu(x_nchw, weight, bias, gamma, beta, kernel_size=3, t_h=None):
    """x_nchw: (N, Cin, H, W); weight: (Cout, Cin, KH, KW) as in nn.Conv2d."""
    N, Cin, H, W = x_nchw.shape
    Cout = weight.shape[0]
    KH = KW = kernel_size
    pad = kernel_size // 2

    # ---- choose the spatial tile (rows of conv-output matmul per grid step) ----
    if t_h is None:
        t_h = H                                     # fallback: one tile per image
        for cand in range(1, H + 1):
            # target up to ~2048 matmul rows per tile, sublane (8) aligned
            if H % cand == 0 and cand * W <= 2048 and (cand * W) % 8 == 0:
                t_h = cand
    assert H % t_h == 0, (H, t_h)
    t_rows = t_h * W
    assert (t_rows % 8 == 0) or (t_rows == H * W), (t_rows, H * W)
    n_th = H // t_h
    HW = H * W
    HWp = (H + 2 * pad) * W

    # ---- glue: KW-expanded (3x, not 9x), H-padded, spatially-flat bf16 operand ----
    # xk[n, hp*W + w, kw*Cin + c] == x_padded[n, hp, w + kw, c]
    x_nhwc = jnp.transpose(x_nchw, (0, 2, 3, 1))
    xw = jnp.pad(x_nhwc, ((0, 0), (0, 0), (pad, pad), (0, 0)))
    cols = [xw[:, :, kw:kw + W, :] for kw in range(KW)]
    xk = jnp.concatenate(cols, axis=-1).reshape(N, HW, KW * Cin)
    xk = jnp.pad(xk, ((0, 0), (pad * W, pad * W), (0, 0))).astype(jnp.bfloat16)

    # w2[kh, kw*Cin + c, co] == weight[co, c, kh, kw]
    w2 = jnp.transpose(weight, (2, 3, 1, 0)).reshape(KH, KW * Cin, Cout)
    w2 = w2.astype(jnp.bfloat16)
    b2 = bias.reshape(1, Cout).astype(jnp.float32)

    cparams = pltpu.CompilerParams(
        dimension_semantics=("parallel", "parallel"),
        vmem_limit_bytes=VMEM_LIMIT_BYTES)

    # ---- kernel 1: conv matmuls + bias + per-tile partial batch stats ----
    # (the whole per-image xk block stays resident across the HW-tile axis; for very
    #  large H*W*Cin it should be halo-tiled instead.)
    conv_out, psum, psq = pl.pallas_call(
        functools.partial(_conv_stats_kernel, t_rows=t_rows, w_cols=W, kh_taps=KH),
        out_shape=(jax.ShapeDtypeStruct((N, HW, Cout), jnp.bfloat16),
                   jax.ShapeDtypeStruct((N, n_th, 1, Cout), jnp.float32),
                   jax.ShapeDtypeStruct((N, n_th, 1, Cout), jnp.float32)),
        grid=(N, n_th),
        in_specs=[pl.BlockSpec((1, HWp, KW * Cin), lambda b, t: (b, 0, 0)),
                  pl.BlockSpec((KH, KW * Cin, Cout), lambda b, t: (0, 0, 0)),
                  pl.BlockSpec((1, Cout), lambda b, t: (0, 0))],
        out_specs=(pl.BlockSpec((1, t_rows, Cout), lambda b, t: (b, t, 0)),
                   pl.BlockSpec((1, 1, 1, Cout), lambda b, t: (b, t, 0, 0)),
                   pl.BlockSpec((1, 1, 1, Cout), lambda b, t: (b, t, 0, 0))),
        compiler_params=cparams,
    )(xk, w2, b2)

    # ---- tiny glue: reduce partial stats, build the BN affine once ----
    count = float(N * H * W)
    total_s = jnp.sum(psum, axis=(0, 1, 2))                    # (Cout,)
    total_sq = jnp.sum(psq, axis=(0, 1, 2))
    mean0 = total_s / count                                    # pre-bias mean
    var = total_sq / count - mean0 * mean0                     # biased var (bias shift-invariant)
    mean = mean0 + bias.astype(jnp.float32)
    inv = jax.lax.rsqrt(var + EPS)
    scale = (gamma.astype(jnp.float32) * inv).reshape(1, 1, Cout)
    shift = (beta.astype(jnp.float32) - mean * gamma.astype(jnp.float32) * inv
             ).reshape(1, 1, Cout)

    # ---- kernel 2: BN normalize + ReLU, in place over conv_out ----
    out = pl.pallas_call(
        _bn_relu_kernel,
        out_shape=jax.ShapeDtypeStruct((N, HW, Cout), jnp.bfloat16),
        grid=(N, n_th),
        in_specs=[pl.BlockSpec((1, t_rows, Cout), lambda b, t: (b, t, 0)),
                  pl.BlockSpec((1, 1, Cout), lambda b, t: (0, 0, 0)),
                  pl.BlockSpec((1, 1, Cout), lambda b, t: (0, 0, 0))],
        out_specs=pl.BlockSpec((1, t_rows, Cout), lambda b, t: (b, t, 0)),
        input_output_aliases={0: 0},
        compiler_params=cparams,
    )(conv_out, scale, shift)

    out = out.reshape(N, H, W, Cout)
    return jnp.transpose(out, (0, 3, 1, 2)).astype(jnp.float32)   # back to NCHW, f32

    # TODO(synk): nn.BatchNorm2d running_mean/running_var bookkeeping is a training
    # side-effect, not part of the forward output, so it is intentionally omitted.


def _reference(x_nchw, weight, bias, gamma, beta):
    """Pure-JAX f32 reference of the PyTorch forward (training-mode BatchNorm)."""
    pad = weight.shape[-1] // 2
    y = jax.lax.conv_general_dilated(
        x_nchw, weight, window_strides=(1, 1), padding=((pad, pad), (pad, pad)),
        dimension_numbers=("NCHW", "OIHW", "NCHW"))
    y = y + bias[None, :, None, None]
    mean = jnp.mean(y, axis=(0, 2, 3), keepdims=True)
    var = jnp.mean((y - mean) ** 2, axis=(0, 2, 3), keepdims=True)
    yn = (y - mean) * jax.lax.rsqrt(var + EPS)
    yn = yn * gamma[None, :, None, None] + beta[None, :, None, None]
    return jnp.maximum(yn, 0.0)


if __name__ == "__main__":
    key = jax.random.PRNGKey(0)
    k_x, k_w, k_b = jax.random.split(key, 3)

    N, Cin, H, W = 2, 4, 16, 16
    Cout, ksize = 64, 3

    x = jax.random.normal(k_x, (N, Cin, H, W), dtype=jnp.float32)
    weight = jax.random.normal(k_w, (Cout, Cin, ksize, ksize), dtype=jnp.float32) * 0.1
    bias = jax.random.normal(k_b, (Cout,), dtype=jnp.float32) * 0.1
    gamma = jnp.ones((Cout,), dtype=jnp.float32)   # nn.BatchNorm2d default weight
    beta = jnp.zeros((Cout,), dtype=jnp.float32)   # nn.BatchNorm2d default bias

    # t_h=8 -> grid (N=2, n_th=2): exercises the spatial tiling / parallel axes.
    out = conv_bn_relu(x, weight, bias, gamma, beta, kernel_size=ksize, t_h=8)
    out = jax.block_until_ready(out)

    ref = _reference(x, weight, bias, gamma, beta)
    assert out.shape == (N, Cout, H, W), out.shape
    max_err = float(jnp.max(jnp.abs(out - ref)))
    # bf16 matmul operands + bf16 intermediate/output => looser tolerance than pure f32.
    assert jnp.allclose(out, ref, rtol=2e-2, atol=5e-2), max_err

    # Also exercise the auto tile-size path once (t_h=None -> one 256-row tile/image).
    out2 = jax.block_until_ready(conv_bn_relu(x, weight, bias, gamma, beta,
                                              kernel_size=ksize))
    assert jnp.allclose(out2, ref, rtol=2e-2, atol=5e-2)

    print("KERNEL_OK")
</pallas_src>

<mosaic_0001>
module attributes {stable_mosaic.version = 11 : i64} {
  func.func @_conv_stats_kernel(%arg0: i32, %arg1: i32, %arg2: memref<1x288x12xbf16, #tpu.memory_space<vmem>>, %arg3: memref<3x12x64xbf16, #tpu.memory_space<vmem>>, %arg4: memref<1x64xf32, #tpu.memory_space<vmem>>, %arg5: memref<1x128x64xbf16, #tpu.memory_space<vmem>>, %arg6: memref<1x1x1x64xf32, #tpu.memory_space<vmem>>, %arg7: memref<1x1x1x64xf32, #tpu.memory_space<vmem>>) attributes {dimension_semantics = [#tpu.dimension_semantics<parallel>, #tpu.dimension_semantics<parallel>], iteration_bounds = array<i64: 2, 2>, scalar_prefetch = 0 : i64, scratch_operands = 0 : i64, tpu.core_type = #tpu.core_type<tc>, window_params = [{transform_indices = @transform_0, window_bounds = array<i64: 1, 288, 12>}, {pipeline_mode = #tpu.pipeline_mode<synchronous>, transform_indices = @transform_1, window_bounds = array<i64: 3, 12, 64>}, {pipeline_mode = #tpu.pipeline_mode<synchronous>, transform_indices = @transform_2, window_bounds = array<i64: 1, 64>}, {transform_indices = @transform_3, window_bounds = array<i64: 1, 128, 64>}, {transform_indices = @transform_4, window_bounds = array<i64: 1, 1, 1, 64>}, {transform_indices = @transform_5, window_bounds = array<i64: 1, 1, 1, 64>}]} {
    %c128_i32 = arith.constant 128 : i32
    %0 = arith.muli %arg1, %c128_i32 : i32
    %cst = arith.constant 0.000000e+00 : f32
    %1 = vector.broadcast %cst : f32 to vector<128x64xf32>
    %c0_i32 = arith.constant 0 : i32
    %2 = arith.addi %0, %c0_i32 : i32
    %3 = tpu.assume_multiple %2, 8 : i32
    %c0 = arith.constant 0 : index
    %4 = arith.index_cast %3 : i32 to index
    %c0_0 = arith.constant 0 : index
    %5 = vector.load %arg2[%c0, %4, %c0_0] : memref<1x288x12xbf16, #tpu.memory_space<vmem>>, vector<1x128x12xbf16>
    %6 = vector.shape_cast %5 : vector<1x128x12xbf16> to vector<128x12xbf16>
    %c0_1 = arith.constant 0 : index
    %c0_2 = arith.constant 0 : index
    %c0_3 = arith.constant 0 : index
    %7 = vector.load %arg3[%c0_1, %c0_2, %c0_3] : memref<3x12x64xbf16, #tpu.memory_space<vmem>>, vector<1x12x64xbf16>
    %8 = vector.shape_cast %7 : vector<1x12x64xbf16> to vector<12x64xbf16>
    %cst_4 = arith.constant dense<0.000000e+00> : vector<128x64xf32>
    %9 = tpu.matmul %6, %8, %cst_4 {dimension_numbers = #tpu.dot_dimension_numbers<[1], [0], [0], [1], [0, 0, 1, 1], [], []>} : vector<128x12xbf16>, vector<12x64xbf16>, vector<128x64xf32> -> vector<128x64xf32>
    %10 = arith.addf %1, %9 : vector<128x64xf32>
    %c16_i32 = arith.constant 16 : i32
    %11 = arith.addi %0, %c16_i32 : i32
    %12 = tpu.assume_multiple %11, 8 : i32
    %c0_5 = arith.constant 0 : index
    %13 = arith.index_cast %12 : i32 to index
    %c0_6 = arith.constant 0 : index
    %14 = vector.load %arg2[%c0_5, %13, %c0_6] : memref<1x288x12xbf16, #tpu.memory_space<vmem>>, vector<1x128x12xbf16>
    %15 = vector.shape_cast %14 : vector<1x128x12xbf16> to vector<128x12xbf16>
    %c1 = arith.constant 1 : index
    %c0_7 = arith.constant 0 : index
    %c0_8 = arith.constant 0 : index
    %16 = vector.load %arg3[%c1, %c0_7, %c0_8] : memref<3x12x64xbf16, #tpu.memory_space<vmem>>, vector<1x12x64xbf16>
    %17 = vector.shape_cast %16 : vector<1x12x64xbf16> to vector<12x64xbf16>
    %cst_9 = arith.constant dense<0.000000e+00> : vector<128x64xf32>
    %18 = tpu.matmul %15, %17, %cst_9 {dimension_numbers = #tpu.dot_dimension_numbers<[1], [0], [0], [1], [0, 0, 1, 1], [], []>} : vector<128x12xbf16>, vector<12x64xbf16>, vector<128x64xf32> -> vector<128x64xf32>
    %19 = arith.addf %10, %18 : vector<128x64xf32>
    %c32_i32 = arith.constant 32 : i32
    %20 = arith.addi %0, %c32_i32 : i32
    %21 = tpu.assume_multiple %20, 8 : i32
    %c0_10 = arith.constant 0 : index
    %22 = arith.index_cast %21 : i32 to index
    %c0_11 = arith.constant 0 : index
    %23 = vector.load %arg2[%c0_10, %22, %c0_11] : memref<1x288x12xbf16, #tpu.memory_space<vmem>>, vector<1x128x12xbf16>
    %24 = vector.shape_cast %23 : vector<1x128x12xbf16> to vector<128x12xbf16>
    %c2 = arith.constant 2 : index
    %c0_12 = arith.constant 0 : index
    %c0_13 = arith.constant 0 : index
    %25 = vector.load %arg3[%c2, %c0_12, %c0_13] : memref<3x12x64xbf16, #tpu.memory_space<vmem>>, vector<1x12x64xbf16>
    %26 = vector.shape_cast %25 : vector<1x12x64xbf16> to vector<12x64xbf16>
    %cst_14 = arith.constant dense<0.000000e+00> : vector<128x64xf32>
    %27 = tpu.matmul %24, %26, %cst_14 {dimension_numbers = #tpu.dot_dimension_numbers<[1], [0], [0], [1], [0, 0, 1, 1], [], []>} : vector<128x12xbf16>, vector<12x64xbf16>, vector<128x64xf32> -> vector<128x64xf32>
    %28 = arith.addf %19, %27 : vector<128x64xf32>
    %cst_15 = arith.constant dense<0.000000e+00> : vector<64xf32>
    %29 = vector.multi_reduction <add>, %28, %cst_15 [0] : vector<128x64xf32> to vector<64xf32>
    %30 = vector.shape_cast %29 : vector<64xf32> to vector<1x64xf32>
    %31 = arith.mulf %28, %28 : vector<128x64xf32>
    %cst_16 = arith.constant dense<0.000000e+00> : vector<64xf32>
    %32 = vector.multi_reduction <add>, %31, %cst_16 [0] : vector<128x64xf32> to vector<64xf32>
    %33 = vector.shape_cast %32 : vector<64xf32> to vector<1x64xf32>
    %34 = vector.shape_cast %30 : vector<1x64xf32> to vector<1x1x1x64xf32>
    %c0_17 = arith.constant 0 : index
    %c0_18 = arith.constant 0 : index
    %c0_19 = arith.constant 0 : index
    %c0_20 = arith.constant 0 : index
    %35 = vector.load %arg6[%c0_17, %c0_18, %c0_19, %c0_20] : memref<1x1x1x64xf32, #tpu.memory_space<vmem>>, vector<1x1x1x64xf32>
    tpu.vector_store %arg6[%c0_17, %c0_18, %c0_19, %c0_20], %34 {strides = array<i32>} : memref<1x1x1x64xf32, #tpu.memory_space<vmem>>, vector<1x1x1x64xf32>,
    %36 = vector.shape_cast %33 : vector<1x64xf32> to vector<1x1x1x64xf32>
    %c0_21 = arith.constant 0 : index
    %c0_22 = arith.constant 0 : index
    %c0_23 = arith.constant 0 : index
    %c0_24 = arith.constant 0 : index
    %37 = vector.load %arg7[%c0_21, %c0_22, %c0_23, %c0_24] : memref<1x1x1x64xf32, #tpu.memory_space<vmem>>, vector<1x1x1x64xf32>
    tpu.vector_store %arg7[%c0_21, %c0_22, %c0_23, %c0_24], %36 {strides = array<i32>} : memref<1x1x1x64xf32, #tpu.memory_space<vmem>>, vector<1x1x1x64xf32>,
    %c0_25 = arith.constant 0 : index
    %c0_26 = arith.constant 0 : index
    %38 = vector.load %arg4[%c0_25, %c0_26] : memref<1x64xf32, #tpu.memory_space<vmem>>, vector<1x64xf32>
    %39 = vector.broadcast %38 : vector<1x64xf32> to vector<128x64xf32>
    %40 = arith.addf %28, %39 : vector<128x64xf32>
    %41 = vector.shape_cast %40 : vector<128x64xf32> to vector<1x128x64xf32>
    %42 = arith.truncf %41 : vector<1x128x64xf32> to vector<1x128x64xbf16>
    %c0_27 = arith.constant 0 : index
    %c0_28 = arith.constant 0 : index
    %c0_29 = arith.constant 0 : index
    %43 = vector.load %arg5[%c0_27, %c0_28, %c0_29] : memref<1x128x64xbf16, #tpu.memory_space<vmem>>, vector<1x128x64xbf16>
    tpu.vector_store %arg5[%c0_27, %c0_28, %c0_29], %42 {strides = array<i32>} : memref<1x128x64xbf16, #tpu.memory_space<vmem>>, vector<1x128x64xbf16>,
    return
  }
  func.func @transform_0(%arg0: i32, %arg1: i32) -> (i32, i32, i32) {
    %c0_i32 = arith.constant 0 : i32
    %c0_i32_0 = arith.constant 0 : i32
    %c0_i32_1 = arith.constant 0 : i32
    return %arg0, %c0_i32, %c0_i32_0 : i32, i32, i32
  }
  func.func @transform_1(%arg0: i32, %arg1: i32) -> (i32, i32, i32) {
    %c0_i32 = arith.constant 0 : i32
    %c0_i32_0 = arith.constant 0 : i32
    %c0_i32_1 = arith.constant 0 : i32
    %c0_i32_2 = arith.constant 0 : i32
    return %c0_i32, %c0_i32_0, %c0_i32_1 : i32, i32, i32
  }
  func.func @transform_2(%arg0: i32, %arg1: i32) -> (i32, i32) {
    %c0_i32 = arith.constant 0 : i32
    %c0_i32_0 = arith.constant 0 : i32
    %c0_i32_1 = arith.constant 0 : i32
    return %c0_i32, %c0_i32_0 : i32, i32
  }
  func.func @transform_3(%arg0: i32, %arg1: i32) -> (i32, i32, i32) {
    %c0_i32 = arith.constant 0 : i32
    %c0_i32_0 = arith.constant 0 : i32
    return %arg0, %arg1, %c0_i32 : i32, i32, i32
  }
  func.func @transform_4(%arg0: i32, %arg1: i32) -> (i32, i32, i32, i32) {
    %c0_i32 = arith.constant 0 : i32
    %c0_i32_0 = arith.constant 0 : i32
    %c0_i32_1 = arith.constant 0 : i32
    return %arg0, %arg1, %c0_i32, %c0_i32_0 : i32, i32, i32, i32
  }
  func.func @transform_5(%arg0: i32, %arg1: i32) -> (i32, i32, i32, i32) {
    %c0_i32 = arith.constant 0 : i32
    %c0_i32_0 = arith.constant 0 : i32
    %c0_i32_1 = arith.constant 0 : i32
    return %arg0, %arg1, %c0_i32, %c0_i32_0 : i32, i32, i32, i32
  }
}

module attributes {stable_mosaic.version = 11 : i64} {
  func.func @_bn_relu_kernel(%arg0: i32, %arg1: i32, %arg2: memref<1x128x64xbf16, #tpu.memory_space<vmem>>, %arg3: memref<1x1x64xf32, #tpu.memory_space<vmem>>, %arg4: memref<1x1x64xf32, #tpu.memory_space<vmem>>, %arg5: memref<1x128x64xbf16, #tpu.memory_space<vmem>>) attributes {dimension_semantics = [#tpu.dimension_semantics<parallel>, #tpu.dimension_semantics<parallel>], iteration_bounds = array<i64: 2, 2>, scalar_prefetch = 0 : i64, scratch_operands = 0 : i64, tpu.core_type = #tpu.core_type<tc>, window_params = [{transform_indices = @transform_0, window_bounds = array<i64: 1, 128, 64>}, {pipeline_mode = #tpu.pipeline_mode<synchronous>, transform_indices = @transform_1, window_bounds = array<i64: 1, 1, 64>}, {pipeline_mode = #tpu.pipeline_mode<synchronous>, transform_indices = @transform_2, window_bounds = array<i64: 1, 1, 64>}, {transform_indices = @transform_3, window_bounds = array<i64: 1, 128, 64>}]} {
    %c0 = arith.constant 0 : index
    %c0_0 = arith.constant 0 : index
    %c0_1 = arith.constant 0 : index
    %0 = vector.load %arg2[%c0, %c0_0, %c0_1] : memref<1x128x64xbf16, #tpu.memory_space<vmem>>, vector<1x128x64xbf16>
    %1 = arith.extf %0 : vector<1x128x64xbf16> to vector<1x128x64xf32>
    %c0_2 = arith.constant 0 : index
    %c0_3 = arith.constant 0 : index
    %c0_4 = arith.constant 0 : index
    %2 = vector.load %arg3[%c0_2, %c0_3, %c0_4] : memref<1x1x64xf32, #tpu.memory_space<vmem>>, vector<1x1x64xf32>
    %3 = vector.broadcast %2 : vector<1x1x64xf32> to vector<1x128x64xf32>
    %4 = arith.mulf %1, %3 : vector<1x128x64xf32>
    %c0_5 = arith.constant 0 : index
    %c0_6 = arith.constant 0 : index
    %c0_7 = arith.constant 0 : index
    %5 = vector.load %arg4[%c0_5, %c0_6, %c0_7] : memref<1x1x64xf32, #tpu.memory_space<vmem>>, vector<1x1x64xf32>
    %6 = vector.broadcast %5 : vector<1x1x64xf32> to vector<1x128x64xf32>
    %7 = arith.addf %4, %6 : vector<1x128x64xf32>
    %cst = arith.constant 0.000000e+00 : f32
    %8 = vector.broadcast %cst : f32 to vector<1x128x64xf32>
    %9 = arith.maximumf %7, %8 : vector<1x128x64xf32>
    %10 = arith.truncf %9 : vector<1x128x64xf32> to vector<1x128x64xbf16>
    %c0_8 = arith.constant 0 : index
    %c0_9 = arith.constant 0 : index
    %c0_10 = arith.constant 0 : index
    %11 = vector.load %arg5[%c0_8, %c0_9, %c0_10] : memref<1x128x64xbf16, #tpu.memory_space<vmem>>, vector<1x128x64xbf16>
    tpu.vector_store %arg5[%c0_8, %c0_9, %c0_10], %10 {strides = array<i32>} : memref<1x128x64xbf16, #tpu.memory_space<vmem>>, vector<1x128x64xbf16>,
    return
  }
  func.func @transform_0(%arg0: i32, %arg1: i32) -> (i32, i32, i32) {
    %c0_i32 = arith.constant 0 : i32
    %c0_i32_0 = arith.constant 0 : i32
    return %arg0, %arg1, %c0_i32 : i32, i32, i32
  }
  func.func @transform_1(%arg0: i32, %arg1: i32) -> (i32, i32, i32) {
    %c0_i32 = arith.constant 0 : i32
    %c0_i32_0 = arith.constant 0 : i32
    %c0_i32_1 = arith.constant 0 : i32
    %c0_i32_2 = arith.constant 0 : i32
    return %c0_i32, %c0_i32_0, %c0_i32_1 : i32, i32, i32
  }
  func.func @transform_2(%arg0: i32, %arg1: i32) -> (i32, i32, i32) {
    %c0_i32 = arith.constant 0 : i32
    %c0_i32_0 = arith.constant 0 : i32
    %c0_i32_1 = arith.constant 0 : i32
    %c0_i32_2 = arith.constant 0 : i32
    return %c0_i32, %c0_i32_0, %c0_i32_1 : i32, i32, i32
  }
  func.func @transform_3(%arg0: i32, %arg1: i32) -> (i32, i32, i32) {
    %c0_i32 = arith.constant 0 : i32
    %c0_i32_0 = arith.constant 0 : i32
    return %arg0, %arg1, %c0_i32 : i32, i32, i32
  }
}

</mosaic_0001>

<bundles_post_ra>
// kernel: conv_bn_relu.3
= control target key start
LH: loop header
LB: loop body
LE: loop exit
PB: predicated region body
PF: predicated region fallthrough
CT: control target
= control target key end

     0   :  { %s661_s12 = smov 0   ;;  %s663_s13 = smov 0   ;;  %s805_s0 = inlined_call_operand.vmem [shape: bf16[2,256,64], index: 0, kind: input, shape index: {}, may-alias: {0,3}]   ;;  %s806_s1 = inlined_call_operand.vmem [shape: f32[1,1,64], index: 1, kind: input, shape index: {}]   ;;  %s807_s2 = inlined_call_operand.vmem [shape: f32[1,1,64], index: 2, kind: input, shape index: {}]   ;;  %s808_s3 = inlined_call_operand.vmem [shape: bf16[2,256,64], index: 3, kind: output, shape index: {}, may-alias: {0,3}]  }
   0x1   :  { %s665_s14 = smov 0   ;;  %s667_s15 = smov 0  }
   0x2   :  { %s669_s16 = smov 0  }
   0x3 LB: > { %s22_s17 = sadd.s32 1, %s631_s14  ;;  %s25_s18 = sadd.s32 1, %s635_s15  ;;  %s639_s16 = sphi %s669_s16, %s13_s16   ;;  %s635_s15 = sphi %s667_s15, %s812_s15   ;;  %s631_s14 = sphi %s665_s14, %s811_s14   ;;  %s627_s13 = sphi %s663_s13, %s810_s13   ;;  %s623_s12 = sphi %s661_s12, %s809_s12  }
   0x4   : > { %p23_p0 = scmp.ge.s32.totalorder %s22_s17, 2  ;;  %p479_p1 = scmp.ge.s32.totalorder %s639_s16, 1 }
   0x5   : > { %p158_p2 = scmp.lt.s32.totalorder %s639_s16, 5 }
   0x6   : > { %s814_s17 = smov (%p23_p0, %s22_s17), 0  ;;  %s816_s18 = smov (!%p23_p0, %s25_s18), %s635_s15 }
   0x7   : > { %p159_p3 = pnand %p479_p1, %p158_p2  ;;  %p27_p4 = scmp.ge.s32.totalorder %s816_s18, 2 }
   0x8   : > { %s480_s19 = sshll.u32 (!%p159_p3), %s623_s12, 4  ;;  %p191_p5 = scmp.lt.s32.totalorder (!%p159_p3), %s627_s13, 1  ;;  %v704_v0 = vld [vmem:[%s806_s1] ss:$0 sm:$0xff] (!%p159_p3)  ;;  %vm368_vm0 = vcmask (!%p159_p3), 519168  }
   0x9   : > { %s818_s18 = smov (%p27_p4, %s816_s18), 0  ;;  %162 = sbr.rel (%p159_p3) target bundleno = 46 (0x2e), region = 32 }
   0xa   : > { %p193_p6 = scmp.lt.s32.totalorder (!%p159_p3), %s480_s19, 31  ;;  %v713_v9 = vld [vmem:[%s807_s2] ss:$0 sm:$0xff] (!%p159_p3) }
  0x10   : > { %s820_s13 = smov (!%p191_p5, %s627_s13), 1  ;;  %s822_s19 = smov (!%p193_p6, %s480_s19), 31 }
  0x11   : > { %s481_s20 = sshll.u32 %s820_s13, 5 }
  0x12   : > { %s691_s21 = sadd.s32 %s481_s20, %s822_s19 }
  0x13   : > { %s482_s22 = sshll.u32 %s691_s21, 2 }
  0x14   : > { %s699_s25 = scalar_lea.vmem %s805_s0, %s482_s22  ;;  %s736_s5 = scalar_lea.vmem %s808_s3, %s482_s22 }
  0x15   : > { %v523_v1 = vld [vmem:[%s699_s25] sm:$0xff]   ;;  %v554_v2 = vld [vmem:[%s699_s25 + $0x8] sm:$0xff]   ;;  %v555_v3 = vld [vmem:[%s699_s25 + $0x10] sm:$0xff]  }
  0x16   : > { %v524_v4 = vunpack.c.l.bf16 %v523_v1  ;;  %v556_v5 = vld [vmem:[%s699_s25 + $0x18] sm:$0xff]   ;;  %v525_v6 = vunpack.c.h.bf16 %v523_v1  ;;  %v528_v7 = vunpack.c.l.bf16 %v554_v2  ;;  %v529_v8 = vunpack.c.h.bf16 %v554_v2  ;;  %v557_v34 = vld [vmem:[%s699_s25 + $0x20] sm:$0xff]   ;;  %v558_v35 = vld [vmem:[%s699_s25 + $0x28] sm:$0xff]  }
  0x17   : > { %v532_v10 = vunpack.c.l.bf16 %v555_v3  ;;  %v533_v11 = vunpack.c.h.bf16 %v555_v3  ;;  %v536_v12 = vunpack.c.l.bf16 %v556_v5  ;;  %v537_v13 = vunpack.c.h.bf16 %v556_v5  ;;  %v559_v40 = vld [vmem:[%s699_s25 + $0x30] sm:$0xff]   ;;  %v560_v41 = vld [vmem:[%s699_s25 + $0x38] sm:$0xff]  }
  0x18   : > { %v249_v14 = vmul.f32 %v524_v4, %v704_v0  ;;  %v250_v15 = vmul.f32 %v525_v6, %v704_v0  ;;  %v251_v16 = vmul.f32 %v528_v7, %v704_v0  ;;  %v252_v17 = vmul.f32 %v529_v8, %v704_v0 }
  0x19   : > { %v253_v18 = vmul.f32 %v532_v10, %v704_v0  ;;  %v254_v19 = vmul.f32 %v533_v11, %v704_v0  ;;  %v255_v20 = vmul.f32 %v536_v12, %v704_v0  ;;  %v256_v21 = vmul.f32 %v537_v13, %v704_v0 }
  0x1a   : > { %v272_v22 = vadd.f32 %v713_v9, %v249_v14  ;;  %v273_v23 = vadd.f32 %v713_v9, %v250_v15  ;;  %v274_v24 = vadd.f32 %v713_v9, %v251_v16  ;;  %v275_v25 = vadd.f32 %v713_v9, %v252_v17 }
  0x1b   : > { %v276_v26 = vadd.f32 %v713_v9, %v253_v18  ;;  %v277_v27 = vadd.f32 %v713_v9, %v254_v19  ;;  %v278_v28 = vadd.f32 %v713_v9, %v255_v20  ;;  %v279_v29 = vadd.f32 %v713_v9, %v256_v21 }
  0x1c   : > { %v288_v30 = vmax.f32 %v272_v22, 0.0  ;;  %v289_v31 = vmax.f32 %v273_v23, 0.0  ;;  %v290_v32 = vmax.f32 %v274_v24, 0.0  ;;  %v291_v33 = vmax.f32 %v275_v25, 0.0 }
  0x1d   : > { %v292_v36 = vmax.f32 %v276_v26, 0.0  ;;  %v293_v37 = vmax.f32 %v277_v27, 0.0  ;;  %v294_v38 = vmax.f32 %v278_v28, 0.0  ;;  %v295_v39 = vmax.f32 %v279_v29, 0.0 }
  0x1e   : > { %v506_v42 = vpack.c.bf16 %v288_v30, %v288_v30  ;;  %v507_v43 = vpack.c.bf16 %v289_v31, %v289_v31  ;;  %v508_v44 = vpack.c.bf16 %v290_v32, %v290_v32  ;;  %v509_v45 = vpack.c.bf16 %v291_v33, %v291_v33 }
  0x1f   : > { %v510_v46 = vpack.c.bf16 %v292_v36, %v292_v36  ;;  %v511_v47 = vpack.c.bf16 %v293_v37, %v293_v37  ;;  %v512_v48 = vpack.c.bf16 %v294_v38, %v294_v38  ;;  %v513_v49 = vpack.c.bf16 %v295_v39, %v295_v39 }
  0x20   : > { %369 = vst.msk [vmem:[%s736_s5] sm:$0xf] %vm368_vm0, %v506_v42  ;;  %370 = vst.msk [vmem:[%s736_s5 + $0x4] sm:$0xf] %vm368_vm0, %v507_v43  ;;  %v540_v50 = vunpack.c.l.bf16 %v557_v34  ;;  %v541_v51 = vunpack.c.h.bf16 %v557_v34  ;;  %v544_v52 = vunpack.c.l.bf16 %v558_v35  ;;  %v545_v53 = vunpack.c.h.bf16 %v558_v35 }
  0x21   : > { %371 = vst.msk [vmem:[%s736_s5 + $0x8] sm:$0xf] %vm368_vm0, %v508_v44  ;;  %372 = vst.msk [vmem:[%s736_s5 + $0xc] sm:$0xf] %vm368_vm0, %v509_v45  ;;  %v548_v54 = vunpack.c.l.bf16 %v559_v40  ;;  %v549_v55 = vunpack.c.h.bf16 %v559_v40  ;;  %v552_v56 = vunpack.c.l.bf16 %v560_v41  ;;  %v553_v57 = vunpack.c.h.bf16 %v560_v41 }
  0x22   : > { %373 = vst.msk [vmem:[%s736_s5 + $0x10] sm:$0xf] %vm368_vm0, %v510_v46  ;;  %374 = vst.msk [vmem:[%s736_s5 + $0x14] sm:$0xf] %vm368_vm0, %v511_v47  ;;  %v257_v58 = vmul.f32 %v540_v50, %v704_v0  ;;  %v258_v59 = vmul.f32 %v541_v51, %v704_v0  ;;  %v259_v60 = vmul.f32 %v544_v52, %v704_v0 }
  0x23   : > { %375 = vst.msk [vmem:[%s736_s5 + $0x18] sm:$0xf] %vm368_vm0, %v512_v48  ;;  %376 = vst.msk [vmem:[%s736_s5 + $0x1c] sm:$0xf] %vm368_vm0, %v513_v49  ;;  %v260_v61 = vmul.f32 %v545_v53, %v704_v0  ;;  %v261_v62 = vmul.f32 %v548_v54, %v704_v0  ;;  %v262_v63 = vmul.f32 %v549_v55, %v704_v0 }
  0x24   : > { %v263_v1 = vmul.f32 %v552_v56, %v704_v0  ;;  %v264_v2 = vmul.f32 %v553_v57, %v704_v0  ;;  %v280_v3 = vadd.f32 %v713_v9, %v257_v58  ;;  %v281_v4 = vadd.f32 %v713_v9, %v258_v59 }
  0x25   : > { %v282_v5 = vadd.f32 %v713_v9, %v259_v60  ;;  %v283_v6 = vadd.f32 %v713_v9, %v260_v61  ;;  %v284_v7 = vadd.f32 %v713_v9, %v261_v62  ;;  %v285_v8 = vadd.f32 %v713_v9, %v262_v63 }
  0x26   : > { %v286_v10 = vadd.f32 %v713_v9, %v263_v1  ;;  %v287_v11 = vadd.f32 %v713_v9, %v264_v2  ;;  %v296_v12 = vmax.f32 %v280_v3, 0.0  ;;  %v297_v13 = vmax.f32 %v281_v4, 0.0 }
  0x27   : > { %v298_v0 = vmax.f32 %v282_v5, 0.0  ;;  %v299_v14 = vmax.f32 %v283_v6, 0.0  ;;  %v300_v15 = vmax.f32 %v284_v7, 0.0  ;;  %v301_v16 = vmax.f32 %v285_v8, 0.0 }
  0x28   : > { %v302_v17 = vmax.f32 %v286_v10, 0.0  ;;  %v303_v18 = vmax.f32 %v287_v11, 0.0  ;;  %v514_v19 = vpack.c.bf16 %v296_v12, %v296_v12  ;;  %v515_v20 = vpack.c.bf16 %v297_v13, %v297_v13 }
  0x29   : > { %v516_v21 = vpack.c.bf16 %v298_v0, %v298_v0  ;;  %v517_v9 = vpack.c.bf16 %v299_v14, %v299_v14  ;;  %v518_v22 = vpack.c.bf16 %v300_v15, %v300_v15  ;;  %v519_v23 = vpack.c.bf16 %v301_v16, %v301_v16 }
  0x2a   : > { %v520_v24 = vpack.c.bf16 %v302_v17, %v302_v17  ;;  %v521_v25 = vpack.c.bf16 %v303_v18, %v303_v18  ;;  %377 = vst.msk [vmem:[%s736_s5 + $0x20] sm:$0xf] %vm368_vm0, %v514_v19  ;;  %378 = vst.msk [vmem:[%s736_s5 + $0x24] sm:$0xf] %vm368_vm0, %v515_v20 }
  0x2b   : > { %379 = vst.msk [vmem:[%s736_s5 + $0x28] sm:$0xf] %vm368_vm0, %v516_v21  ;;  %380 = vst.msk [vmem:[%s736_s5 + $0x2c] sm:$0xf] %vm368_vm0, %v517_v9 }
  0x2c   : > { %381 = vst.msk [vmem:[%s736_s5 + $0x30] sm:$0xf] %vm368_vm0, %v518_v22  ;;  %382 = vst.msk [vmem:[%s736_s5 + $0x34] sm:$0xf] %vm368_vm0, %v519_v23 }
  0x2d   : > { %383 = vst.msk [vmem:[%s736_s5 + $0x38] sm:$0xf] %vm368_vm0, %v520_v24  ;;  %384 = vst.msk [vmem:[%s736_s5 + $0x3c] sm:$0xf] %vm368_vm0, %v521_v25 }
  0x2e PF: > { %s13_s16 = sadd.s32 1, %s639_s16   ;;  %s809_s12 = smov %s631_s14 }
  0x2f   : > { %p10_p7 = scmp.ge.s32.totalorder %s13_s16, 6   ;;  %s810_s13 = smov %s635_s15 }
  0x30   : > { %s811_s14 = smov %s814_s17  ;;  %s812_s15 = smov %s818_s18 }
  0x31   :  { %12 = sbr.rel (!%p10_p7) target bundleno = 3 (0x3), region = 62 }

// kernel: conv_bn_relu.2
= control target key start
LH: loop header
LB: loop body
LE: loop exit
PB: predicated region body
PF: predicated region fallthrough
CT: control target
= control target key end

     0   :  { %s1614_s18 = smov 0   ;;  %s1616_s19 = smov 0   ;;  %s1842_s0 = inlined_call_operand.vmem [shape: bf16[2,288,12], index: 0, kind: input, shape index: {}]   ;;  %s1843_s1 = inlined_call_operand.vmem [shape: bf16[3,12,64], index: 1, kind: input, shape index: {}]   ;;  %s1844_s2 = inlined_call_operand.vmem [shape: f32[1,64], index: 2, kind: input, shape index: {}]   ;;  %s1845_s3 = inlined_call_operand.vmem [shape: bf16[2,256,64], index: 3, kind: output, shape index: {0}]   ;;  %s1846_s4 = inlined_call_operand.vmem [shape: f32[2,2,1,64], index: 4, kind: output, shape index: {1}]   ;;  %s1847_s5 = inlined_call_operand.vmem [shape: f32[2,2,1,64], index: 5, kind: output, shape index: {2}]  }
   0x1   :  { %s1618_s20 = smov 0   ;;  %s1620_s21 = smov 0  }
   0x2   :  { %s1622_s22 = smov 0  }
   0x3 LB: > { %s25_s23 = sadd.s32 1, %s1574_s20  ;;  %s28_s24 = sadd.s32 1, %s1578_s21  ;;  %s1582_s22 = sphi %s1622_s22, %s16_s22   ;;  %s1578_s21 = sphi %s1620_s21, %s1851_s21   ;;  %s1574_s20 = sphi %s1618_s20, %s1850_s20   ;;  %s1570_s19 = sphi %s1616_s19, %s1849_s19   ;;  %s1566_s18 = sphi %s1614_s18, %s1848_s18  }
   0x4   : > { %p26_p0 = scmp.ge.s32.totalorder %s25_s23, 2  ;;  %p1256_p1 = scmp.ge.s32.totalorder %s1582_s22, 1 }
   0x5   : > { %p210_p2 = scmp.lt.s32.totalorder %s1582_s22, 5 }
   0x6   : > { %s1853_s23 = smov (%p26_p0, %s25_s23), 0  ;;  %s1855_s24 = smov (!%p26_p0, %s28_s24), %s1578_s21 }
   0x7   : > { %p211_p3 = pnand %p1256_p1, %p210_p2  ;;  %p30_p4 = scmp.ge.s32.totalorder %s1855_s24, 2 }
   0x8   : > { %v1517_v0 = vld [vmem:[%s1843_s1 + $0x8] sm:$0x3f] (!%p211_p3)   ;;  %vm403_vm0 = vcmask (!%p211_p3), 1045504   ;;  %p256_p5 = scmp.lt.s32.totalorder (!%p211_p3), %s1570_s19, 1  ;;  %v1518_v1 = vld [vmem:[%s1843_s1] sm:$0x3f] (!%p211_p3)  }
   0x9   : > { %s1857_s24 = smov (%p30_p4, %s1855_s24), 0  ;;  %214 = sbr.rel (%p211_p3) target bundleno = 305 (0x131), region = 32 }
   0xa   : > { %1472 = vmatprep.subr.msk.bf16.mxu1 (!%p211_p3), %vm403_vm0, %v1517_v0  ;;  %v405_v2 = vsel (!%p211_p3), %vm403_vm0, %v1517_v0, 0  ;;  %s1263_s29 = sshll.u32 (!%p211_p3), %s1566_s18, 7  ;;  %1473 = vmatprep.subr.msk.bf16.mxu0 (!%p211_p3), %vm403_vm0, %v1518_v1  ;;  %v574_v3 = vsel (!%p211_p3), %vm403_vm0, %v1518_v1, 0  ;;  %v1521_v4 = vld [vmem:[%s1843_s1 + $0x10] sm:$0x3f] (!%p211_p3)   ;;  %vm378_vm1 = vcmask (!%p211_p3), 97280  }
   0xb   : > { %1385 = vmatpush3.bf16.msra.mxu1 (!%p211_p3), %v405_v2  ;;  %s309_s30 = sadd.s32 (!%p211_p3), 16, %s1263_s29  ;;  %1403 = vmatpush3.bf16.msra.mxu0 (!%p211_p3), %v574_v3  ;;  %s673_s15 = sadd.s32 (!%p211_p3), 32, %s1263_s29  ;;  %v767_v10 = vsel (!%p211_p3), %vm403_vm0, %v1521_v4, 0  ;;  %v1730_v39 = vld [vmem:[%s1844_s2] ss:$0 sm:$0xff] (!%p211_p3)  ;;  %vm882_vm2 = vcmask (!%p211_p3), 523264  }
   0xc   : > { %1474 = vmatprep.subr.msk.bf16.mxu1 (!%p211_p3), %vm403_vm0, %v1518_v1  ;;  %s310_s9 = sshra.s32 (!%p211_p3), %s309_s30, 3  ;;  %1475 = vmatprep.subr.msk.bf16.mxu0 (!%p211_p3), %vm403_vm0, %v1521_v4  ;;  %s287_s16 = sshra.s32 (!%p211_p3), %s1263_s29, 3  ;;  %vm1063_vm3 = vcmask (!%p211_p3), 519168   ;;  %vm973_vm4 = vcmask (!%p211_p3), 516096  }
   0xd   : > { %s1265_s10 = sshll.u32 (!%p211_p3), %s310_s9, 2  ;;  %s1264_s17 = sshll.u32 (!%p211_p3), %s287_s16, 2 }
   0xe   : > { %s674_s25 = sshra.s32 (!%p211_p3), %s673_s15, 3  ;;  %s1258_s29 = sshll.u32 (!%p211_p3), %s1566_s18, 4 }
   0xf   : > { %s1302_s27 = sshll.u32 (!%p211_p3), %s674_s25, 2  ;;  %p264_p6 = scmp.lt.s32.totalorder (!%p211_p3), %s1258_s29, 31 }
  0x10   : > { %s1859_s19 = smov (!%p256_p5, %s1570_s19), 1  ;;  %p273_p7 = scmp.lt.s32.totalorder %s1566_s18, 1 }
  0x11   : > { %s1476_s8 = smul.u32 144, %s1859_s19  ;;  %s1861_s29 = smov (!%p264_p6, %s1258_s29), 31 }
  0x12   : > { %s1259_s30 = sshll.u32 %s1859_s19, 5  ;;  %s1863_s18 = smov (!%p273_p7, %s1566_s18), 1 }
  0x13   : > { %s260_s13 = scalar_lea.vmem %s1842_s0, %s1476_s8  ;;  %s267_s6 = sadd.s32 %s1259_s30, %s1861_s29 }
  0x14   : > { %s1668_s14 = scalar_lea.vmem %s260_s13, %s1265_s10  ;;  %s1673_s26 = scalar_lea.vmem %s260_s13, %s1264_s17 }
  0x15   : > { %v1519_v5 = vld [vmem:[%s1668_s14] sm:$0xff]   ;;  %v1522_v6 = vld [vmem:[%s1668_s14 + $0x8] sm:$0xff]   ;;  %v1524_v7 = vld [vmem:[%s1668_s14 + $0x10] sm:$0xff]   ;;  %s1686_s28 = scalar_lea.vmem %s260_s13, %s1302_s27  ;;  %s1260_s9 = sshll.u32 %s267_s6, 2 }
  0x16   : > { %1386 = vmatprep.mubr.msk.bf16.mxu1 %vm378_vm1, %v1519_v5  ;;  %v1520_v8 = vld [vmem:[%s1673_s26] sm:$0xff]   ;;  %v1523_v9 = vld [vmem:[%s1673_s26 + $0x8] sm:$0xff]   ;;  %v1525_v11 = vld [vmem:[%s1673_s26 + $0x10] sm:$0xff]   ;;  %s1736_s12 = scalar_lea.vmem %s1845_s3, %s1260_s9  ;;  %s1261_s13 = sshll.u32 %s1859_s19, 1 }
  0x17   : > { %1387 = vmatmul.mubr.msk.bf16.vlgmr.msra.gmra.mrb[0].mxu1 %vm378_vm1, %v1522_v6  ;;  %1404 = vmatprep.mubr.msk.bf16.mxu0 %vm378_vm1, %v1520_v8  ;;  %v1526_v12 = vld [vmem:[%s1668_s14 + $0x18] sm:$0xff]   ;;  %v1528_v13 = vld [vmem:[%s1668_s14 + $0x20] sm:$0xff]   ;;  %v1530_v16 = vld [vmem:[%s1668_s14 + $0x28] sm:$0xff]  }
  0x18   : > { %1439 = vmatpush3.bf16.msra.mxu1 %v574_v3  ;;  %1390 = vmatprep.mubr.msk.bf16.mxu1 %vm378_vm1, %v1524_v7  ;;  %v1527_v14 = vld [vmem:[%s1673_s26 + $0x18] sm:$0xff]   ;;  %v1529_v15 = vld [vmem:[%s1686_s28] sm:$0xff]   ;;  %v1532_v17 = vld [vmem:[%s1668_s14 + $0x30] sm:$0xff]  }
  0x19   : > { %1405 = vmatmul.mubr.msk.bf16.vlgmr.msra.gmra.mrb[0].mxu0 %vm378_vm1, %v1523_v9  ;;  %v1531_v18 = vld [vmem:[%s1686_s28 + $0x8] sm:$0xff]   ;;  %v1533_v19 = vld [vmem:[%s1686_s28 + $0x10] sm:$0xff]   ;;  %v1534_v20 = vld [vmem:[%s1668_s14 + $0x38] sm:$0xff]   ;;  %s276_s14 = sadd.s32 %s1261_s13, %s1863_s18 }
  0x1a   : > { %1421 = vmatpush3.bf16.msra.mxu0 %v767_v10  ;;  %1408 = vmatprep.mubr.msk.bf16.mxu0 %vm378_vm1, %v1525_v11  ;;  %v1536_v21 = vld [vmem:[%s1673_s26 + $0x20] sm:$0xff]   ;;  %v1535_v22 = vld [vmem:[%s1686_s28 + $0x18] sm:$0xff]   ;;  %v1538_v24 = vld [vmem:[%s1673_s26 + $0x28] sm:$0xff]   ;;  %s277_s17 = scalar_lea.vmem %s1846_s4, %s276_s14  ;;  %s284_s27 = scalar_lea.vmem %s1847_s5, %s276_s14 }
  0x1b   : > { %v1537_v23 = vld [vmem:[%s1686_s28 + $0x20] sm:$0xff]   ;;  %v1540_v25 = vld [vmem:[%s1673_s26 + $0x30] sm:$0xff]   ;;  %v1539_v26 = vld [vmem:[%s1686_s28 + $0x28] sm:$0xff]  }
  0x1c   : > { %v1541_v27 = vld [vmem:[%s1686_s28 + $0x30] sm:$0xff]   ;;  %v1542_v28 = vld [vmem:[%s1673_s26 + $0x38] sm:$0xff]  }
  0x1d   : > { %v1543_v29 = vld [vmem:[%s1686_s28 + $0x38] sm:$0xff]  }
  0x1f   : > { %1391 = vmatmul.mubr.msk.bf16.gmra.mrb[4].mxu1 %vm378_vm1, %v1526_v12 }
  0x20   : > { %1394 = vmatprep.mubr.msk.bf16.mxu1 %vm378_vm1, %v1528_v13 }
  0x21   : > { %1409 = vmatmul.mubr.msk.bf16.gmra.mrb[4].mxu0 %vm378_vm1, %v1527_v14 }
  0x22   : > { %1422 = vmatprep.mubr.msk.bf16.mxu0 %vm378_vm1, %v1529_v15 }
  0x27   : > { %1395 = vmatmul.mubr.msk.bf16.gmra.mrb[8].mxu1 %vm378_vm1, %v1530_v16 }
  0x28   : > { %1398 = vmatprep.mubr.msk.bf16.mxu1 %vm378_vm1, %v1532_v17 }
  0x29   : > { %1423 = vmatmul.mubr.msk.bf16.vlgmr.msra.gmra.mrb[0].mxu0 %vm378_vm1, %v1531_v18 }
  0x2a   : > { %1426 = vmatprep.mubr.msk.bf16.mxu0 %vm378_vm1, %v1533_v19 }
  0x2f   : > { %1399 = vmatmul.mubr.msk.bf16.gmra.mrb[12].mxu1 %vm378_vm1, %v1534_v20 }
  0x30   : > { %1412 = vmatprep.mubr.msk.bf16.mxu1 %vm378_vm1, %v1536_v21 }
  0x31   : > { %1427 = vmatmul.mubr.msk.bf16.gmra.mrb[4].mxu0 %vm378_vm1, %v1535_v22 }
  0x32   : > { %1430 = vmatprep.mubr.msk.bf16.mxu0 %vm378_vm1, %v1537_v23 }
  0x37   : > { %1413 = vmatmul.mubr.msk.bf16.vlgmr.msra.gmra.mrb[8].mxu1 %vm378_vm1, %v1538_v24 }
  0x38   : > { %1416 = vmatprep.mubr.msk.bf16.mxu1 %vm378_vm1, %v1540_v25 }
  0x39   : > { %1431 = vmatmul.mubr.msk.bf16.gmra.mrb[8].mxu0 %vm378_vm1, %v1539_v26 }
  0x3a   : > { %1434 = vmatprep.mubr.msk.bf16.mxu0 %vm378_vm1, %v1541_v27 }
  0x3f   : > { %1417 = vmatmul.mubr.msk.bf16.gmra.mrb[12].mxu1 %vm378_vm1, %v1542_v28 }
  0x41   : > { %1435 = vmatmul.mubr.msk.bf16.gmra.mrb[12].mxu0 %vm378_vm1, %v1543_v29 }
  0xea   : > { %v1388_v30 = vpop.f32.mrb[0].mxu1 }
  0xeb   : > { %v441_v31 = vpop.f32.mrb[1].mxu1 }
  0xec   : > { %v1389_v32 = vpop.f32.mrb[2].mxu1 }
  0xed   : > { %v444_v33 = vpop.f32.mrb[3].mxu1 }
  0xf2   : > { %v1392_v34 = vpop.f32.mrb[4].mxu1 }
  0xf3   : > { %v457_v35 = vpop.f32.mrb[5].mxu1 }
  0xf4   : > { %v1393_v36 = vpop.f32.mrb[6].mxu1 }
  0xf5   : > { %v1724_v37 = vpop.f32.mrb[7].mxu1 }
  0xfc   : > { %v1424_v38 = vpop.f32.mrb[0].mxu0 }
  0xfd   : > { %v1440_v40 = vadd.f32 %v1424_v38, %v1388_v30  ;;  %v803_v41 = vpop.f32.mrb[1].mxu0 }
  0xfe   : > { %v1441_v42 = vadd.f32 %v803_v41, %v441_v31  ;;  %v1425_v43 = vpop.f32.mrb[2].mxu0 }
  0xff   : > { %v985_v44 = vadd.f32 %v1440_v40, %v1730_v39  ;;  %v1442_v45 = vadd.f32 %v1425_v43, %v1389_v32  ;;  %v806_v46 = vpop.f32.mrb[3].mxu0  ;;  %v922_v55 = vmul.f32 %v1440_v40, %v1440_v40  ;;  %v886_v59 = vsel %vm882_vm2, %v1440_v40, 0.0 }
 0x100   : > { %v920_v47 = vmul.f32 %v1441_v42, %v1441_v42  ;;  %v983_v48 = vadd.f32 %v1441_v42, %v1730_v39  ;;  %v1443_v49 = vadd.f32 %v806_v46, %v444_v33  ;;  %v883_v51 = vsel %vm882_vm2, %v1441_v42, 0.0 }
 0x101   : > { %v1343_v50 = vpack.c.bf16 %v985_v44, %v985_v44  ;;  %v986_v53 = vadd.f32 %v1442_v45, %v1730_v39  ;;  %v923_v61 = vmul.f32 %v1442_v45, %v1442_v45  ;;  %v888_v5 = vsel %vm882_vm2, %v1442_v45, 0.0 }
 0x102   : > { %v1341_v52 = vpack.c.bf16 %v983_v48, %v983_v48  ;;  %v884_v54 = vsel %vm882_vm2, %v1443_v49, 0.0  ;;  %v921_v57 = vmul.f32 %v1443_v49, %v1443_v49  ;;  %v984_v58 = vadd.f32 %v1443_v49, %v1730_v39 }
 0x103   : > { %1066 = vst.msk [vmem:[%s1736_s12 + $0x8] sm:$0xf] %vm1063_vm3, %v1343_v50  ;;  %v885_v56 = vadd.f32 %v884_v54, %v883_v51  ;;  %v936_v60 = vsel %vm882_vm2, %v920_v47, 0.0  ;;  %v1344_v62 = vpack.c.bf16 %v986_v53, %v986_v53  ;;  %v939_v9 = vsel %vm882_vm2, %v922_v55, 0.0 }
 0x104   : > { %1064 = vst.msk [vmem:[%s1736_s12] sm:$0xf] %vm1063_vm3, %v1341_v52  ;;  %v1428_v63 = vpop.f32.mrb[4].mxu0  ;;  %v937_v1 = vsel %vm882_vm2, %v921_v57, 0.0  ;;  %v1342_v2 = vpack.c.bf16 %v984_v58, %v984_v58  ;;  %v941_v17 = vsel %vm882_vm2, %v923_v61, 0.0 }
 0x105   : > { %v887_v0 = vadd.f32 %v886_v59, %v885_v56  ;;  %v1444_v3 = vadd.f32 %v1428_v63, %v1392_v34  ;;  %v819_v4 = vpop.f32.mrb[5].mxu0  ;;  %1067 = vst.msk [vmem:[%s1736_s12 + $0xc] sm:$0xf] %vm1063_vm3, %v1344_v62  ;;  %v938_v6 = vadd.f32 %v937_v1, %v936_v60 }
 0x106   : > { %v1445_v7 = vadd.f32 %v819_v4, %v457_v35  ;;  %v1429_v8 = vpop.f32.mrb[6].mxu0  ;;  %1065 = vst.msk [vmem:[%s1736_s12 + $0x4] sm:$0xf] %vm1063_vm3, %v1342_v2 }
 0x107   : > { %v989_v10 = vadd.f32 %v1444_v3, %v1730_v39  ;;  %v889_v11 = vadd.f32 %v888_v5, %v887_v0  ;;  %v822_v12 = vpop.f32.mrb[7].mxu0  ;;  %v940_v13 = vadd.f32 %v939_v9, %v938_v6  ;;  %v1446_v20 = vadd.f32 %v1429_v8, %v1393_v36 }
 0x108   : > { %v890_v14 = vsel %vm882_vm2, %v1445_v7, 0.0  ;;  %v924_v15 = vmul.f32 %v1445_v7, %v1445_v7  ;;  %v987_v16 = vadd.f32 %v1445_v7, %v1730_v39  ;;  %v1447_v25 = vadd.f32 %v822_v12, %v1724_v37 }
 0x109   : > { %v1347_v18 = vpack.c.bf16 %v989_v10, %v989_v10  ;;  %v891_v19 = vadd.f32 %v890_v14, %v889_v11  ;;  %v942_v22 = vadd.f32 %v941_v17, %v940_v13  ;;  %v926_v27 = vmul.f32 %v1444_v3, %v1444_v3 }
 0x10a   : > { %v1414_v21 = vpop.f32.mrb[8].mxu1  ;;  %v943_v23 = vsel %vm882_vm2, %v924_v15, 0.0  ;;  %v1345_v24 = vpack.c.bf16 %v987_v16, %v987_v16  ;;  %v990_v28 = vadd.f32 %v1446_v20, %v1730_v39  ;;  %v892_v31 = vsel %vm882_vm2, %v1447_v25, 0.0 }
 0x10b   : > { %v642_v26 = vpop.f32.mrb[9].mxu1  ;;  %1070 = vst.msk [vmem:[%s1736_s12 + $0x18] sm:$0xf] %vm1063_vm3, %v1347_v18  ;;  %v944_v30 = vadd.f32 %v943_v23, %v942_v22  ;;  %v925_v32 = vmul.f32 %v1447_v25, %v1447_v25  ;;  %v988_v33 = vadd.f32 %v1447_v25, %v1730_v39  ;;  %v927_v36 = vmul.f32 %v1446_v20, %v1446_v20 }
 0x10c   : > { %v1415_v29 = vpop.f32.mrb[10].mxu1  ;;  %1068 = vst.msk [vmem:[%s1736_s12 + $0x10] sm:$0xf] %vm1063_vm3, %v1345_v24  ;;  %v1432_v34 = vpop.f32.mrb[8].mxu0  ;;  %v1348_v37 = vpack.c.bf16 %v990_v28, %v990_v28  ;;  %v893_v38 = vadd.f32 %v892_v31, %v891_v19  ;;  %v894_v42 = vsel %vm882_vm2, %v1444_v3, 0.0  ;;  %v947_v47 = vsel %vm882_vm2, %v926_v27, 0.0 }
 0x10d   : > { %v645_v35 = vpop.f32.mrb[11].mxu1  ;;  %v1448_v40 = vadd.f32 %v1432_v34, %v1414_v21  ;;  %v835_v41 = vpop.f32.mrb[9].mxu0  ;;  %v945_v43 = vsel %vm882_vm2, %v925_v32, 0.0  ;;  %v1346_v44 = vpack.c.bf16 %v988_v33, %v988_v33  ;;  %v896_v48 = vsel %vm882_vm2, %v1446_v20, 0.0 }
 0x10e   : > { %v1449_v45 = vadd.f32 %v835_v41, %v642_v26  ;;  %v1433_v46 = vpop.f32.mrb[10].mxu0  ;;  %1071 = vst.msk [vmem:[%s1736_s12 + $0x1c] sm:$0xf] %vm1063_vm3, %v1348_v37  ;;  %v895_v49 = vadd.f32 %v894_v42, %v893_v38  ;;  %v946_v50 = vadd.f32 %v945_v43, %v944_v30  ;;  %v949_v56 = vsel %vm882_vm2, %v927_v36, 0.0 }
 0x10f   : > { %v838_v51 = vpop.f32.mrb[11].mxu0  ;;  %1069 = vst.msk [vmem:[%s1736_s12 + $0x14] sm:$0xf] %vm1063_vm3, %v1346_v44  ;;  %v993_v52 = vadd.f32 %v1448_v40, %v1730_v39  ;;  %v1450_v59 = vadd.f32 %v1433_v46, %v1415_v29  ;;  %v902_v2 = vsel %vm882_vm2, %v1448_v40, 0.0  ;;  %v930_v3 = vmul.f32 %v1448_v40, %v1448_v40 }
 0x110   : > { %v898_v53 = vsel %vm882_vm2, %v1449_v45, 0.0  ;;  %v928_v54 = vmul.f32 %v1449_v45, %v1449_v45  ;;  %v991_v55 = vadd.f32 %v1449_v45, %v1730_v39  ;;  %v948_v57 = vadd.f32 %v947_v47, %v946_v50 }
 0x111   : > { %v897_v58 = vadd.f32 %v896_v48, %v895_v49  ;;  %v1351_v61 = vpack.c.bf16 %v993_v52, %v993_v52  ;;  %v1451_v0 = vadd.f32 %v838_v51, %v645_v35  ;;  %v994_v7 = vadd.f32 %v1450_v59, %v1730_v39 }
 0x112   : > { %v1418_v60 = vpop.f32.mrb[12].mxu1  ;;  %v951_v62 = vsel %vm882_vm2, %v928_v54, 0.0  ;;  %v1349_v63 = vpack.c.bf16 %v991_v55, %v991_v55  ;;  %v950_v5 = vadd.f32 %v949_v56, %v948_v57  ;;  %v931_v14 = vmul.f32 %v1450_v59, %v1450_v59 }
 0x113   : > { %v658_v1 = vpop.f32.mrb[13].mxu1  ;;  %v899_v4 = vadd.f32 %v898_v53, %v897_v58  ;;  %1074 = vst.msk [vmem:[%s1736_s12 + $0x28] sm:$0xf] %vm1063_vm3, %v1351_v61  ;;  %v900_v8 = vsel %vm882_vm2, %v1451_v0, 0.0  ;;  %v929_v9 = vmul.f32 %v1451_v0, %v1451_v0  ;;  %v992_v10 = vadd.f32 %v1451_v0, %v1730_v39 }
 0x114   : > { %v1419_v6 = vpop.f32.mrb[14].mxu1  ;;  %1072 = vst.msk [vmem:[%s1736_s12 + $0x20] sm:$0xf] %vm1063_vm3, %v1349_v63  ;;  %v1436_v11 = vpop.f32.mrb[12].mxu0  ;;  %v952_v13 = vadd.f32 %v951_v62, %v950_v5  ;;  %v1352_v18 = vpack.c.bf16 %v994_v7, %v994_v7  ;;  %v955_v23 = vsel %vm882_vm2, %v930_v3, 0.0  ;;  %v904_v24 = vsel %vm882_vm2, %v1450_v59, 0.0 }
 0x115   : > { %v661_v12 = vpop.f32.mrb[15].mxu1  ;;  %v901_v15 = vadd.f32 %v900_v8, %v899_v4  ;;  %v1452_v16 = vadd.f32 %v1436_v11, %v1418_v60  ;;  %v851_v17 = vpop.f32.mrb[13].mxu0  ;;  %v953_v19 = vsel %vm882_vm2, %v929_v9, 0.0  ;;  %v1350_v20 = vpack.c.bf16 %v992_v10, %v992_v10 }
 0x116   : > { %v1453_v21 = vadd.f32 %v851_v17, %v658_v1  ;;  %v1437_v22 = vpop.f32.mrb[14].mxu0  ;;  %v954_v26 = vadd.f32 %v953_v19, %v952_v13  ;;  %1075 = vst.msk [vmem:[%s1736_s12 + $0x2c] sm:$0xf] %vm1063_vm3, %v1352_v18  ;;  %v957_v32 = vsel %vm882_vm2, %v931_v14, 0.0 }
 0x117   : > { %v903_v25 = vadd.f32 %v902_v2, %v901_v15  ;;  %v854_v27 = vpop.f32.mrb[15].mxu0  ;;  %1073 = vst.msk [vmem:[%s1736_s12 + $0x24] sm:$0xf] %vm1063_vm3, %v1350_v20  ;;  %v997_v28 = vadd.f32 %v1452_v16, %v1730_v39  ;;  %v1454_v35 = vadd.f32 %v1437_v22, %v1419_v6  ;;  %v934_v41 = vmul.f32 %v1452_v16, %v1452_v16 }
 0x118   : > { %v906_v29 = vsel %vm882_vm2, %v1453_v21, 0.0  ;;  %v932_v30 = vmul.f32 %v1453_v21, %v1453_v21  ;;  %v995_v31 = vadd.f32 %v1453_v21, %v1730_v39  ;;  %v956_v33 = vadd.f32 %v955_v23, %v954_v26 }
 0x119   : > { %v905_v34 = vadd.f32 %v904_v24, %v903_v25  ;;  %v1355_v36 = vpack.c.bf16 %v997_v28, %v997_v28  ;;  %v1455_v40 = vadd.f32 %v854_v27, %v661_v12  ;;  %v998_v44 = vadd.f32 %v1454_v35, %v1730_v39 }
 0x11a   : > { %v959_v37 = vsel %vm882_vm2, %v932_v30, 0.0  ;;  %v1353_v38 = vpack.c.bf16 %v995_v31, %v995_v31  ;;  %v958_v43 = vadd.f32 %v957_v32, %v956_v33  ;;  %v910_v48 = vsel %vm882_vm2, %v1452_v16, 0.0 }
 0x11b   : > { %v907_v42 = vadd.f32 %v906_v29, %v905_v34  ;;  %1078 = vst.msk [vmem:[%s1736_s12 + $0x38] sm:$0xf] %vm1063_vm3, %v1355_v36  ;;  %v908_v45 = vsel %vm882_vm2, %v1455_v40, 0.0  ;;  %v933_v46 = vmul.f32 %v1455_v40, %v1455_v40  ;;  %v996_v47 = vadd.f32 %v1455_v40, %v1730_v39 }
 0x11c   : > { %1076 = vst.msk [vmem:[%s1736_s12 + $0x30] sm:$0xf] %vm1063_vm3, %v1353_v38  ;;  %v960_v49 = vadd.f32 %v959_v37, %v958_v43  ;;  %v935_v51 = vmul.f32 %v1454_v35, %v1454_v35  ;;  %v1356_v52 = vpack.c.bf16 %v998_v44, %v998_v44  ;;  %v963_v57 = vsel %vm882_vm2, %v934_v41, 0.0 }
 0x11d   : > { %v909_v50 = vadd.f32 %v908_v45, %v907_v42  ;;  %v961_v53 = vsel %vm882_vm2, %v933_v46, 0.0  ;;  %v1354_v54 = vpack.c.bf16 %v996_v47, %v996_v47  ;;  %v912_v58 = vsel %vm882_vm2, %v1454_v35, 0.0 }
 0x11e   : > { %v962_v56 = vadd.f32 %v961_v53, %v960_v49  ;;  %1079 = vst.msk [vmem:[%s1736_s12 + $0x3c] sm:$0xf] %vm1063_vm3, %v1356_v52  ;;  %v965_v60 = vsel %vm882_vm2, %v935_v51, 0.0 }
 0x11f   : > { %v911_v55 = vadd.f32 %v910_v48, %v909_v50  ;;  %1077 = vst.msk [vmem:[%s1736_s12 + $0x34] sm:$0xf] %vm1063_vm3, %v1354_v54 }
 0x120   : > { %v964_v59 = vadd.f32 %v963_v57, %v962_v56 }
 0x121   : > { %v913_v39 = vadd.f32 %v912_v58, %v911_v55 }
 0x122   : > { %v966_v62 = vadd.f32 %v965_v60, %v964_v59 }
 0x123   : > { %v914_v61 = vrot.slane %v913_v39, 4 }
 0x124   : > { %v967_v0 = vrot.slane %v966_v62, 4 }
 0x125   : > { %v915_v63 = vadd.f32 %v914_v61, %v913_v39 }
 0x126   : > { %v968_v2 = vadd.f32 %v967_v0, %v966_v62 }
 0x127   : > { %v916_v1 = vrot.slane %v915_v63, 2 }
 0x128   : > { %v969_v4 = vrot.slane %v968_v2, 2 }
 0x129   : > { %v917_v3 = vadd.f32 %v916_v1, %v915_v63 }
 0x12a   : > { %v970_v6 = vadd.f32 %v969_v4, %v968_v2 }
 0x12b   : > { %v918_v5 = vrot.slane %v917_v3, 1 }
 0x12c   : > { %v971_v8 = vrot.slane %v970_v6, 1 }
 0x12d   : > { %v919_v7 = vadd.f32 %v918_v5, %v917_v3 }
 0x12e   : > { %v972_v9 = vadd.f32 %v971_v8, %v970_v6 }
 0x12f   : > { %974 = vst.msk [vmem:[%s277_s17] sm:$0x1] %vm973_vm4, %v919_v7 }
 0x130   : > { %975 = vst.msk [vmem:[%s284_s27] sm:$0x1] %vm973_vm4, %v972_v9 }
 0x131 PF: > { %s16_s22 = sadd.s32 1, %s1582_s22   ;;  %s1848_s18 = smov %s1574_s20 }
 0x132   : > { %p13_p8 = scmp.ge.s32.totalorder %s16_s22, 6   ;;  %s1849_s19 = smov %s1578_s21 }
 0x133   : > { %s1850_s20 = smov %s1853_s23  ;;  %s1851_s21 = smov %s1857_s24 }
 0x134   :  { %15 = sbr.rel (!%p13_p8) target bundleno = 3 (0x3), region = 91 }

</bundles_post_ra>
